<compile_context>
chip_gen: v7x
topology: tpu7x:2x2x1
jax: 0.10.0
libtpu: 0.0.40
codegen_flags: <defaults>
</compile_context>

<pallas_src>
import numpy as np
import jax
import jax.numpy as jnp
from jax.experimental import pallas as pl
from jax.experimental.pallas import tpu as pltpu


_PART = (8, 128)  # one lane-dense per-grid-step partial-sum output block (full vreg tile)


# ---------------------------- matched-pair MSE kernel ----------------------------
def _match_kernel(e1_ref, e2_ref, gt_ref, sq_ref, k_ref):
    # Blocks: e1 (G, tn1, D), e2 (G, tn2, D) native dtype, gt (G, tn1, tn2) int8 {0,1}.
    e1f = e1_ref[...].astype(jnp.float32)
    e2 = e2_ref[...]
    e2f = e2.astype(jnp.float32)
    m_i8 = gt_ref[...]
    maskf = m_i8.astype(jnp.float32)          # exact 0/1 counts (f32 sums exact < 2^24)

    row_m = jnp.sum(maskf, axis=2)            # (G, tn1) matches per e1 row
    col_m = jnp.sum(maskf, axis=1)            # (G, tn2) matches per e2 row
    k = jnp.sum(row_m, axis=1, keepdims=True)  # (G, 1) matched pairs in this tile

    n1sq = jnp.sum(e1f * e1f, axis=2)         # (G, tn1) ||e1_i||^2
    n2sq = jnp.sum(e2f * e2f, axis=2)         # (G, tn2) ||e2_j||^2

    # Only remaining MXU work: mask @ e2 (contract over N2), in e2's native dtype.
    # Mask entries are exactly 0/1, so only e2's own precision enters the cross term.
    mask_mm = maskf if e2.dtype == jnp.float32 else m_i8.astype(e2.dtype)
    me2 = jnp.einsum('gij,gjd->gid', mask_mm, e2,
                     preferred_element_type=jnp.float32)       # (G, tn1, D)

    term1 = jnp.sum(row_m * n1sq, axis=1, keepdims=True)               # (G, 1)
    term2 = jnp.sum(col_m * n2sq, axis=1, keepdims=True)               # (G, 1)
    cross = jnp.sum(jnp.sum(e1f * me2, axis=2), axis=1, keepdims=True)  # (G, 1)
    sq = term1 + term2 - 2.0 * cross   # = sum_{ij in tile} m_ij * ||e1_i - e2_j||^2

    # Lane-dense unmasked stores of per-(sample, tile) partials; reduced later in XLA.
    sq_ref[...] = jnp.zeros(sq_ref.shape, jnp.float32) + sq[:, :, None, None]
    k_ref[...] = jnp.zeros(k_ref.shape, jnp.float32) + k[:, :, None, None]


def _pick_tile(n, pref, align):
    """Largest multiple of `align` that divides n and is <= pref; else full n."""
    if n <= pref:
        return n
    t = (min(pref, n) // align) * align
    while t >= align:
        if n % t == 0:
            return t
        t -= align
    # TODO(synk): non-divisible large N falls back to full extent (no edge masking needed);
    # add edge-tile masking if such shapes ever appear in training.
    return n


def _largest_divisor_leq(n, cap):
    cap = max(1, min(n, cap))
    for g in range(cap, 0, -1):
        if n % g == 0:
            return g
    return 1


def match_loss_pallas(e1, e2, gt):
    """Returns (sum over batch of per-sample matched-pair MSE, number of samples with >=1 match)."""
    B, N1, D = e1.shape
    _, N2, _ = e2.shape

    # Threshold once in the wrapper: int8 mask cuts the dominant N^2 DMA & VMEM 4x vs f32.
    mask = (gt > 0).astype(jnp.int8)

    esz = e1.dtype.itemsize
    tn1 = _pick_tile(N1, 256, 32)      # 32-aligned: safe for int8 mask sublane packing
    tn2 = _pick_tile(N2, 512, 128)
    if tn1 == N1 and tn2 == N2:
        # Small keypoint counts: pack several batch samples per grid step to amortize
        # the per-step fixed cost (and to give both v7x TCs work when B is small).
        per_sample = N1 * N2 + (N1 + N2) * D * esz
        G = _largest_divisor_leq(B, max(1, (2 << 20) // max(per_sample, 1)))
    else:
        G = 1
    n1t, n2t = N1 // tn1, N2 // tn2
    T = n1t * n2t
    grid = (B // G, n1t, n2t)

    sq_parts, k_parts = pl.pallas_call(
        _match_kernel,
        out_shape=(jax.ShapeDtypeStruct((B, T) + _PART, jnp.float32),
                   jax.ShapeDtypeStruct((B, T) + _PART, jnp.float32)),
        grid_spec=pltpu.PrefetchScalarGridSpec(
            num_scalar_prefetch=0,
            grid=grid,
            in_specs=[
                pl.BlockSpec((G, tn1, D), lambda b, i, j: (b, i, 0)),
                pl.BlockSpec((G, tn2, D), lambda b, i, j: (b, j, 0)),
                pl.BlockSpec((G, tn1, tn2), lambda b, i, j: (b, i, j)),
            ],
            out_specs=(
                pl.BlockSpec((G, 1) + _PART, lambda b, i, j: (b, i * n2t + j, 0, 0)),
                pl.BlockSpec((G, 1) + _PART, lambda b, i, j: (b, i * n2t + j, 0, 0)),
            ),
        ),
        compiler_params=pltpu.CompilerParams(
            dimension_semantics=("parallel", "parallel", "parallel"),
            vmem_limit_bytes=64 * 1024 * 1024),
    )(e1, e2, mask)

    # Tiny finalize in XLA over (B,) scalars.
    sq_b = jnp.sum(sq_parts[:, :, 0, 0], axis=1)
    k_b = jnp.sum(k_parts[:, :, 0, 0], axis=1)
    sq_b = jnp.maximum(sq_b, 0.0)                     # guard f32 cancellation when e1 ~= e2
    loss_b = jnp.where(k_b > 0, sq_b / (jnp.maximum(k_b, 1.0) * jnp.float32(D)), 0.0)
    return jnp.sum(loss_b), jnp.sum((k_b > 0).astype(jnp.float32))


# ------------------- reconstruction squared-diff-sum kernel (fused pairs) -------------------
def _make_recon_kernel(npairs, rtot, rblk):
    needs_mask = (rtot % rblk) != 0
    last = pl.cdiv(rtot, rblk) - 1

    def kernel(*refs):
        in_refs = refs[:2 * npairs]
        out_ref = refs[2 * npairs]

        sq = jnp.zeros((rblk, 128), jnp.float32)
        for p in range(npairs):
            a = in_refs[2 * p][...].astype(jnp.float32)
            b = in_refs[2 * p + 1][...].astype(jnp.float32)
            d = a - b
            sq = sq + d * d

        if not needs_mask:
            out_ref[...] = jnp.zeros(out_ref.shape, jnp.float32) + jnp.sum(sq)
        else:
            i = pl.program_id(0)

            @pl.when(i != last)           # fast path: no OOB masking on interior tiles
            def _():
                out_ref[...] = jnp.zeros(out_ref.shape, jnp.float32) + jnp.sum(sq)

            @pl.when(i == last)           # last tile: zero undefined out-of-bounds rows
            def _():
                rows = jax.lax.broadcasted_iota(jnp.int32, (rblk, 128), 0) + i * rblk
                msq = jnp.where(rows < rtot, sq, 0.0)
                out_ref[...] = jnp.zeros(out_ref.shape, jnp.float32) + jnp.sum(msq)

    return kernel


def _to_slab(x):
    """Free row-major reshape to a lane-dense (rows, 128) slab (no copies on the common path)."""
    t = int(np.prod(x.shape))
    if t % 128 == 0:
        return x.reshape(t // 128, 128)
    # TODO(synk): lane-unaligned element count -> one zero-pad copy (zeros add 0 to the
    # squared-diff sum); never hit when C*H*W is a multiple of 128 as for depth maps here.
    pad = (-t) % 128
    return jnp.pad(x.reshape(-1), (0, pad)).reshape(-1, 128)


def recon_sq_sum_pallas(pairs):
    """sum over pairs of sum((a - b)^2). All pairs must have equal element counts."""
    slabs = []
    for a, b in pairs:
        slabs.append(_to_slab(a))
        slabs.append(_to_slab(b))
    rtot = slabs[0].shape[0]
    itemsize = max(s.dtype.itemsize for s in slabs)
    rblk_max = 2048 if itemsize >= 4 else 4096   # ~1 MiB per input DMA buffer either way
    rblk = rtot if rtot <= rblk_max else rblk_max
    grid = pl.cdiv(rtot, rblk)
    kernel = _make_recon_kernel(len(pairs), rtot, rblk)
    out = pl.pallas_call(
        kernel,
        out_shape=jax.ShapeDtypeStruct((grid,) + _PART, jnp.float32),
        grid_spec=pltpu.PrefetchScalarGridSpec(
            num_scalar_prefetch=0,
            grid=(grid,),
            in_specs=[pl.BlockSpec((rblk, 128), lambda i: (i, 0)) for _ in slabs],
            out_specs=pl.BlockSpec((1,) + _PART, lambda i: (i, 0, 0)),
        ),
        compiler_params=pltpu.CompilerParams(
            dimension_semantics=("parallel",),
            vmem_limit_bytes=32 * 1024 * 1024),
    )(*slabs)
    return jnp.sum(out[:, 0, 0])


def _recon_mse_sum(d1_out, d1, d2_out, d2):
    """sum_b MSE(d1_out[b], d1[b]) + sum_b MSE(d2_out[b], d2[b])."""
    p1 = int(np.prod(d1.shape[1:]))
    p2 = int(np.prod(d2.shape[1:]))
    if d1.shape == d2.shape:
        # fused: one pallas_call streams all four tensors
        return recon_sq_sum_pallas([(d1_out, d1), (d2_out, d2)]) / jnp.float32(p1)
    return (recon_sq_sum_pallas([(d1_out, d1)]) / jnp.float32(p1)
            + recon_sq_sum_pallas([(d2_out, d2)]) / jnp.float32(p2))


# ---------------------------------- module forward ----------------------------------
def mse_corresponding_loss(final_score, embs, gt_matches, epoch):
    # final_score is unused by the PyTorch forward; CosineSimilarity is defined but unused.
    depth_emb1, depth_emb2, depth1_out, depth1, depth2_out, depth2 = embs
    total, count = match_loss_pallas(depth_emb1, depth_emb2, gt_matches)
    if epoch < 10:  # epoch is a static Python int, as in the PyTorch training loop
        total = total + _recon_mse_sum(depth1_out, depth1, depth2_out, depth2)
    # NOTE: like the PyTorch reference, count == 0 (no sample with any match) divides by zero.
    return total / count


# --------------------- pure-numpy reference (exact PyTorch semantics) ---------------------
def ref_loss(embs, gt_matches, epoch):
    depth_emb1, depth_emb2, depth1_out, depth1, depth2_out, depth2 = [
        np.asarray(x, dtype=np.float64) for x in embs]
    gt = np.asarray(gt_matches)
    total = 0.0
    cnt = 0
    for b in range(gt.shape[0]):
        idx = np.argwhere(gt[b] > 0)
        if idx.shape[0] > 0:
            e1 = depth_emb1[b][idx[:, 0]]
            e2 = depth_emb2[b][idx[:, 1]]
            total += np.mean((e1 - e2) ** 2)
            cnt += 1
    if epoch < 10:
        for b in range(depth1.shape[0]):
            total += np.mean((depth1_out[b] - depth1[b]) ** 2)
            total += np.mean((depth2_out[b] - depth2[b]) ** 2)
    return total / cnt


if __name__ == "__main__":
    key = jax.random.PRNGKey(0)
    B, N, D = 2, 8, 32
    C, H, W = 4, 16, 16
    ks = jax.random.split(key, 8)

    depth_emb1 = jax.random.normal(ks[0], (B, N, D), jnp.float32)
    depth_emb2 = jax.random.normal(ks[1], (B, N, D), jnp.float32)
    depth1_out = jax.random.normal(ks[2], (B, C, H, W), jnp.float32)
    depth1     = jax.random.normal(ks[3], (B, C, H, W), jnp.float32)
    depth2_out = jax.random.normal(ks[4], (B, C, H, W), jnp.float32)
    depth2     = jax.random.normal(ks[5], (B, C, H, W), jnp.float32)
    gt_matches = (jax.random.uniform(ks[6], (B, N, N)) > 0.7).astype(jnp.float32)
    gt_matches = gt_matches.at[:, 0, 0].set(1.0)   # guarantee >= 1 match per sample
    final_score = jax.random.normal(ks[7], (B, N, N), jnp.float32)  # unused by forward

    embs = (depth_emb1, depth_emb2, depth1_out, depth1, depth2_out, depth2)
    epoch = 3

    loss_fn = jax.jit(mse_corresponding_loss, static_argnums=(3,))
    out = loss_fn(final_score, embs, gt_matches, epoch)
    out = jax.block_until_ready(out)

    ref = ref_loss(embs, np.asarray(gt_matches), epoch)
    assert np.allclose(np.asarray(out), ref, rtol=1e-4, atol=1e-4), (float(out), float(ref))
    print("KERNEL_OK")
</pallas_src>

<mosaic_0001>
module attributes {stable_mosaic.version = 11 : i64} {
  func.func @_match_kernel(%arg0: i32, %arg1: i32, %arg2: i32, %arg3: memref<2x8x32xf32, #tpu.memory_space<vmem>>, %arg4: memref<2x8x32xf32, #tpu.memory_space<vmem>>, %arg5: memref<2x8x8xi8, #tpu.memory_space<vmem>>, %arg6: memref<2x1x8x128xf32, #tpu.memory_space<vmem>>, %arg7: memref<2x1x8x128xf32, #tpu.memory_space<vmem>>) attributes {dimension_semantics = [#tpu.dimension_semantics<parallel>, #tpu.dimension_semantics<parallel>, #tpu.dimension_semantics<parallel>], iteration_bounds = array<i64: 1, 1, 1>, scalar_prefetch = 0 : i64, scratch_operands = 0 : i64, tpu.core_type = #tpu.core_type<tc>, window_params = [{transform_indices = @transform_0, window_bounds = array<i64: 2, 8, 32>}, {transform_indices = @transform_1, window_bounds = array<i64: 2, 8, 32>}, {transform_indices = @transform_2, window_bounds = array<i64: 2, 8, 8>}, {transform_indices = @transform_3, window_bounds = array<i64: 2, 1, 8, 128>}, {transform_indices = @transform_4, window_bounds = array<i64: 2, 1, 8, 128>}]} {
    %c0 = arith.constant 0 : index
    %c0_0 = arith.constant 0 : index
    %c0_1 = arith.constant 0 : index
    %0 = vector.load %arg3[%c0, %c0_0, %c0_1] : memref<2x8x32xf32, #tpu.memory_space<vmem>>, vector<2x8x32xf32>
    %c0_2 = arith.constant 0 : index
    %c0_3 = arith.constant 0 : index
    %c0_4 = arith.constant 0 : index
    %1 = vector.load %arg4[%c0_2, %c0_3, %c0_4] : memref<2x8x32xf32, #tpu.memory_space<vmem>>, vector<2x8x32xf32>
    %c0_5 = arith.constant 0 : index
    %c0_6 = arith.constant 0 : index
    %c0_7 = arith.constant 0 : index
    %2 = vector.load %arg5[%c0_5, %c0_6, %c0_7] : memref<2x8x8xi8, #tpu.memory_space<vmem>>, vector<2x8x8xi8>
    %3 = arith.sitofp %2 : vector<2x8x8xi8> to vector<2x8x8xf32>
    %cst = arith.constant dense<0.000000e+00> : vector<2x8xf32>
    %4 = vector.multi_reduction <add>, %3, %cst [2] : vector<2x8x8xf32> to vector<2x8xf32>
    %cst_8 = arith.constant dense<0.000000e+00> : vector<2x8xf32>
    %5 = vector.multi_reduction <add>, %3, %cst_8 [1] : vector<2x8x8xf32> to vector<2x8xf32>
    %cst_9 = arith.constant dense<0.000000e+00> : vector<2xf32>
    %6 = vector.multi_reduction <add>, %4, %cst_9 [1] : vector<2x8xf32> to vector<2xf32>
    %7 = vector.shape_cast %6 : vector<2xf32> to vector<2x1xf32>
    %8 = arith.mulf %0, %0 : vector<2x8x32xf32>
    %cst_10 = arith.constant dense<0.000000e+00> : vector<2x8xf32>
    %9 = vector.multi_reduction <add>, %8, %cst_10 [2] : vector<2x8x32xf32> to vector<2x8xf32>
    %10 = arith.mulf %1, %1 : vector<2x8x32xf32>
    %cst_11 = arith.constant dense<0.000000e+00> : vector<2x8xf32>
    %11 = vector.multi_reduction <add>, %10, %cst_11 [2] : vector<2x8x32xf32> to vector<2x8xf32>
    "tpu.trace_start"() <{level = 10 : i32, message = "gij,gjd->gid"}> : () -> ()
    %cst_12 = arith.constant dense<0.000000e+00> : vector<2x8x32xf32>
    %12 = tpu.matmul %3, %1, %cst_12 {dimension_numbers = #tpu.dot_dimension_numbers<[2], [1], [1], [2], [0, 0, 0, 1, 1, 2], [0], [0]>} : vector<2x8x8xf32>, vector<2x8x32xf32>, vector<2x8x32xf32> -> vector<2x8x32xf32>
    "tpu.trace_stop"() : () -> ()
    %13 = arith.mulf %4, %9 : vector<2x8xf32>
    %cst_13 = arith.constant dense<0.000000e+00> : vector<2xf32>
    %14 = vector.multi_reduction <add>, %13, %cst_13 [1] : vector<2x8xf32> to vector<2xf32>
    %15 = vector.shape_cast %14 : vector<2xf32> to vector<2x1xf32>
    %16 = arith.mulf %5, %11 : vector<2x8xf32>
    %cst_14 = arith.constant dense<0.000000e+00> : vector<2xf32>
    %17 = vector.multi_reduction <add>, %16, %cst_14 [1] : vector<2x8xf32> to vector<2xf32>
    %18 = vector.shape_cast %17 : vector<2xf32> to vector<2x1xf32>
    %19 = arith.mulf %0, %12 : vector<2x8x32xf32>
    %cst_15 = arith.constant dense<0.000000e+00> : vector<2x8xf32>
    %20 = vector.multi_reduction <add>, %19, %cst_15 [2] : vector<2x8x32xf32> to vector<2x8xf32>
    %cst_16 = arith.constant dense<0.000000e+00> : vector<2xf32>
    %21 = vector.multi_reduction <add>, %20, %cst_16 [1] : vector<2x8xf32> to vector<2xf32>
    %22 = vector.shape_cast %21 : vector<2xf32> to vector<2x1xf32>
    %23 = arith.addf %15, %18 : vector<2x1xf32>
    %cst_17 = arith.constant 2.000000e+00 : f32
    %24 = vector.broadcast %cst_17 : f32 to vector<2x1xf32>
    %25 = arith.mulf %24, %22 : vector<2x1xf32>
    %26 = arith.subf %23, %25 : vector<2x1xf32>
    %cst_18 = arith.constant 0.000000e+00 : f32
    %27 = vector.broadcast %cst_18 : f32 to vector<2x1x8x128xf32>
    %28 = vector.shape_cast %26 : vector<2x1xf32> to vector<2x1x1x1xf32>
    %29 = vector.broadcast %28 : vector<2x1x1x1xf32> to vector<2x1x8x128xf32>
    %30 = arith.addf %27, %29 : vector<2x1x8x128xf32>
    %c0_19 = arith.constant 0 : index
    %c0_20 = arith.constant 0 : index
    %c0_21 = arith.constant 0 : index
    %c0_22 = arith.constant 0 : index
    %31 = vector.load %arg6[%c0_19, %c0_20, %c0_21, %c0_22] : memref<2x1x8x128xf32, #tpu.memory_space<vmem>>, vector<2x1x8x128xf32>
    tpu.vector_store %arg6[%c0_19, %c0_20, %c0_21, %c0_22], %30 {strides = array<i32>} : memref<2x1x8x128xf32, #tpu.memory_space<vmem>>, vector<2x1x8x128xf32>,
    %cst_23 = arith.constant 0.000000e+00 : f32
    %32 = vector.broadcast %cst_23 : f32 to vector<2x1x8x128xf32>
    %33 = vector.shape_cast %7 : vector<2x1xf32> to vector<2x1x1x1xf32>
    %34 = vector.broadcast %33 : vector<2x1x1x1xf32> to vector<2x1x8x128xf32>
    %35 = arith.addf %32, %34 : vector<2x1x8x128xf32>
    %c0_24 = arith.constant 0 : index
    %c0_25 = arith.constant 0 : index
    %c0_26 = arith.constant 0 : index
    %c0_27 = arith.constant 0 : index
    %36 = vector.load %arg7[%c0_24, %c0_25, %c0_26, %c0_27] : memref<2x1x8x128xf32, #tpu.memory_space<vmem>>, vector<2x1x8x128xf32>
    tpu.vector_store %arg7[%c0_24, %c0_25, %c0_26, %c0_27], %35 {strides = array<i32>} : memref<2x1x8x128xf32, #tpu.memory_space<vmem>>, vector<2x1x8x128xf32>,
    return
  }
  func.func @transform_0(%arg0: i32, %arg1: i32, %arg2: i32) -> (i32, i32, i32) {
    %c0_i32 = arith.constant 0 : i32
    %c0_i32_0 = arith.constant 0 : i32
    return %arg0, %arg1, %c0_i32 : i32, i32, i32
  }
  func.func @transform_1(%arg0: i32, %arg1: i32, %arg2: i32) -> (i32, i32, i32) {
    %c0_i32 = arith.constant 0 : i32
    %c0_i32_0 = arith.constant 0 : i32
    return %arg0, %arg2, %c0_i32 : i32, i32, i32
  }
  func.func @transform_2(%arg0: i32, %arg1: i32, %arg2: i32) -> (i32, i32, i32) {
    %c0_i32 = arith.constant 0 : i32
    return %arg0, %arg1, %arg2 : i32, i32, i32
  }
  func.func @transform_3(%arg0: i32, %arg1: i32, %arg2: i32) -> (i32, i32, i32, i32) {
    %c1_i32 = arith.constant 1 : i32
    %0 = arith.muli %arg1, %c1_i32 : i32
    %1 = arith.addi %0, %arg2 : i32
    %c0_i32 = arith.constant 0 : i32
    %c0_i32_0 = arith.constant 0 : i32
    %c0_i32_1 = arith.constant 0 : i32
    return %arg0, %1, %c0_i32, %c0_i32_0 : i32, i32, i32, i32
  }
  func.func @transform_4(%arg0: i32, %arg1: i32, %arg2: i32) -> (i32, i32, i32, i32) {
    %c1_i32 = arith.constant 1 : i32
    %0 = arith.muli %arg1, %c1_i32 : i32
    %1 = arith.addi %0, %arg2 : i32
    %c0_i32 = arith.constant 0 : i32
    %c0_i32_0 = arith.constant 0 : i32
    %c0_i32_1 = arith.constant 0 : i32
    return %arg0, %1, %c0_i32, %c0_i32_0 : i32, i32, i32, i32
  }
}

module attributes {stable_mosaic.version = 11 : i64} {
  func.func @kernel(%arg0: i32, %arg1: memref<16x128xf32, #tpu.memory_space<vmem>>, %arg2: memref<16x128xf32, #tpu.memory_space<vmem>>, %arg3: memref<16x128xf32, #tpu.memory_space<vmem>>, %arg4: memref<16x128xf32, #tpu.memory_space<vmem>>, %arg5: memref<1x8x128xf32, #tpu.memory_space<vmem>>) attributes {dimension_semantics = [#tpu.dimension_semantics<parallel>], iteration_bounds = array<i64: 1>, scalar_prefetch = 0 : i64, scratch_operands = 0 : i64, tpu.core_type = #tpu.core_type<tc>, window_params = [{transform_indices = @transform_0, window_bounds = array<i64: 16, 128>}, {transform_indices = @transform_1, window_bounds = array<i64: 16, 128>}, {transform_indices = @transform_2, window_bounds = array<i64: 16, 128>}, {transform_indices = @transform_3, window_bounds = array<i64: 16, 128>}, {transform_indices = @transform_4, window_bounds = array<i64: 1, 8, 128>}]} {
    %cst = arith.constant 0.000000e+00 : f32
    %0 = vector.broadcast %cst : f32 to vector<16x128xf32>
    %c0 = arith.constant 0 : index
    %c0_0 = arith.constant 0 : index
    %1 = vector.load %arg1[%c0, %c0_0] : memref<16x128xf32, #tpu.memory_space<vmem>>, vector<16x128xf32>
    %c0_1 = arith.constant 0 : index
    %c0_2 = arith.constant 0 : index
    %2 = vector.load %arg2[%c0_1, %c0_2] : memref<16x128xf32, #tpu.memory_space<vmem>>, vector<16x128xf32>
    %3 = arith.subf %1, %2 : vector<16x128xf32>
    %4 = arith.mulf %3, %3 : vector<16x128xf32>
    %5 = arith.addf %0, %4 : vector<16x128xf32>
    %c0_3 = arith.constant 0 : index
    %c0_4 = arith.constant 0 : index
    %6 = vector.load %arg3[%c0_3, %c0_4] : memref<16x128xf32, #tpu.memory_space<vmem>>, vector<16x128xf32>
    %c0_5 = arith.constant 0 : index
    %c0_6 = arith.constant 0 : index
    %7 = vector.load %arg4[%c0_5, %c0_6] : memref<16x128xf32, #tpu.memory_space<vmem>>, vector<16x128xf32>
    %8 = arith.subf %6, %7 : vector<16x128xf32>
    %9 = arith.mulf %8, %8 : vector<16x128xf32>
    %10 = arith.addf %5, %9 : vector<16x128xf32>
    %cst_7 = arith.constant 0.000000e+00 : f32
    %11 = vector.broadcast %cst_7 : f32 to vector<1x8x128xf32>
    %12 = vector.shape_cast %10 : vector<16x128xf32> to vector<1x16x128xf32>
    %cst_8 = arith.constant dense<0.000000e+00> : vector<1xf32>
    %13 = vector.multi_reduction <add>, %12, %cst_8 [1, 2] : vector<1x16x128xf32> to vector<1xf32>
    %14 = vector.shape_cast %13 : vector<1xf32> to vector<1x1x1xf32>
    %15 = vector.extract %14[0, 0, 0] : f32 from vector<1x1x1xf32>
    %16 = vector.broadcast %15 : f32 to vector<1x8x128xf32>
    %17 = arith.addf %11, %16 : vector<1x8x128xf32>
    %c0_9 = arith.constant 0 : index
    %c0_10 = arith.constant 0 : index
    %c0_11 = arith.constant 0 : index
    %18 = vector.load %arg5[%c0_9, %c0_10, %c0_11] : memref<1x8x128xf32, #tpu.memory_space<vmem>>, vector<1x8x128xf32>
    tpu.vector_store %arg5[%c0_9, %c0_10, %c0_11], %17 {strides = array<i32>} : memref<1x8x128xf32, #tpu.memory_space<vmem>>, vector<1x8x128xf32>,
    return
  }
  func.func @transform_0(%arg0: i32) -> (i32, i32) {
    %c0_i32 = arith.constant 0 : i32
    %c0_i32_0 = arith.constant 0 : i32
    return %arg0, %c0_i32 : i32, i32
  }
  func.func @transform_1(%arg0: i32) -> (i32, i32) {
    %c0_i32 = arith.constant 0 : i32
    %c0_i32_0 = arith.constant 0 : i32
    return %arg0, %c0_i32 : i32, i32
  }
  func.func @transform_2(%arg0: i32) -> (i32, i32) {
    %c0_i32 = arith.constant 0 : i32
    %c0_i32_0 = arith.constant 0 : i32
    return %arg0, %c0_i32 : i32, i32
  }
  func.func @transform_3(%arg0: i32) -> (i32, i32) {
    %c0_i32 = arith.constant 0 : i32
    %c0_i32_0 = arith.constant 0 : i32
    return %arg0, %c0_i32 : i32, i32
  }
  func.func @transform_4(%arg0: i32) -> (i32, i32, i32) {
    %c0_i32 = arith.constant 0 : i32
    %c0_i32_0 = arith.constant 0 : i32
    %c0_i32_1 = arith.constant 0 : i32
    return %arg0, %c0_i32, %c0_i32_0 : i32, i32, i32
  }
}

</mosaic_0001>

<bundles_post_ra>
// kernel: mse_corresponding_loss.2
= control target key start
LH: loop header
LB: loop body
LE: loop exit
PB: predicated region body
PF: predicated region fallthrough
CT: control target
= control target key end

     0   :  { %10 = vsyncpa [#allocation3], 0  ;;  %s694_s0 = inlined_call_operand.hbm [shape: f32[2,8,32], index: 0, kind: input, shape index: {}]   ;;  %s695_s1 = inlined_call_operand.hbm [shape: f32[2,8,32], index: 1, kind: input, shape index: {}]   ;;  %s696_s2 = inlined_call_operand.hbm [shape: s8[2,8,8], index: 2, kind: input, shape index: {}]   ;;  %s697_s3 = inlined_call_operand.hbm [shape: f32[2,1,8,128], index: 3, kind: output, shape index: {0}]   ;;  %s698_s4 = inlined_call_operand.hbm [shape: f32[2,1,8,128], index: 4, kind: output, shape index: {1}]  }
   0x1   :  { %11 = vsyncpa [#allocation6], 0 }
   0x2   :  { %12 = vsyncpa [#allocation4], 0 }
   0x3   :  { %13 = vsyncpa [#allocation10], 0  ;;  %s556_s15 = smov [#allocation5]   ;;  %s557_s17 = smov [#allocation2]  }
   0x4   :  { %s31_s16 = sshll.u32 %s556_s15, 4  ;;  %s19_s18 = sshll.u32 %s557_s17, 4  ;;  %s32_s16 = int_to_ptr.vmem [resolvable:$true] %s31_s16  ;;  %s592_s18 = int_to_ptr.vmem [resolvable:$true] %s19_s18 }
   0x5   :  { %s438_s21 = scalar_lea.hbm %s695_s1, 256 }
   0x6   :  { %p439_p0 = scmp.ne.s32.totalorder %s695_s1, %s438_s21  ;;  %p442_p1 = scmp.lt.u32.totalorder %s438_s21, %s695_s1 }
   0x8   :  { %p444_p2 = pnand %p442_p1, %p439_p0 }
   0xa   :  { %447 = shalt.err (!%p444_p2)
}
   0xb   :  { %s448_s26 = scalar_lea.vmem %s32_s16, 256  ;;  %p453_p4 = scmp.lt.s32.totalorder %s32_s16, %s32_s16 }
   0xc   :  { %p449_p3 = scmp.ne.s32.totalorder %s32_s16, %s448_s26  ;;  %p454_p5 = scmp.lt.s32.totalorder %s448_s26, %s448_s26 }
   0xe   :  { %p455_p6 = por %p454_p5, %p453_p4 }
  0x10   :  { %p456_p7 = pnand %p455_p6, %p449_p3 }
  0x12   :  { %459 = shalt.err (!%p456_p7)
}
  0x13   :  { %s558_s27 = smov 128   ;;  %s559_s28 = smov 8  }
  0x14   :  { %37 = dma.hbm_to_vmem [thread:$0]  %s695_s1, 256, %s32_s16, [#allocation6], %s558_s27, %s558_s27, %s559_s28  }
  0x15   :  { %s460_s7 = scalar_lea.hbm %s694_s0, 256 }
  0x16   :  { %p461_p8 = scmp.ne.s32.totalorder %s694_s0, %s460_s7  ;;  %p464_p9 = scmp.lt.u32.totalorder %s460_s7, %s694_s0 }
  0x18   :  { %p466_p10 = pnand %p464_p9, %p461_p8 }
  0x1a   :  { %469 = shalt.err (!%p466_p10)
}
  0x1b   :  { %s470_s12 = scalar_lea.vmem %s592_s18, 256  ;;  %p475_p12 = scmp.lt.s32.totalorder %s592_s18, %s592_s18 }
  0x1c   :  { %p471_p11 = scmp.ne.s32.totalorder %s592_s18, %s470_s12  ;;  %p476_p13 = scmp.lt.s32.totalorder %s470_s12, %s470_s12 }
  0x1e   :  { %p477_p0 = por %p476_p13, %p475_p12 }
  0x20   :  { %p478_p1 = pnand %p477_p0, %p471_p11 }
  0x22   :  { %481 = shalt.err (!%p478_p1)
}
  0x23   :  { %25 = dma.hbm_to_vmem [thread:$0]  %s694_s0, 256, %s592_s18, [#allocation3], %s558_s27, %s558_s27, %s559_s28  }
  0x24   :  { %s560_s14 = smov [#allocation7]   ;;  %s482_s19 = scalar_lea.hbm %s696_s2, 64 }
  0x25   :  { %s43_s15 = sshll.u32 %s560_s14, 4  ;;  %p483_p2 = scmp.ne.s32.totalorder %s696_s2, %s482_s19  ;;  %s44_s15 = int_to_ptr.vmem [resolvable:$true] %s43_s15 }
  0x26   :  { %p486_p3 = scmp.lt.u32.totalorder %s482_s19, %s696_s2 }
  0x28   :  { %p488_p4 = pnand %p486_p3, %p483_p2 }
  0x2a   :  { %491 = shalt.err (!%p488_p4)
}
  0x2b   :  { %s492_s24 = scalar_lea.vmem %s44_s15, 64  ;;  %p497_p6 = scmp.lt.s32.totalorder %s44_s15, %s44_s15 }
  0x2c   :  { %p493_p5 = scmp.ne.s32.totalorder %s44_s15, %s492_s24  ;;  %p498_p7 = scmp.lt.s32.totalorder %s492_s24, %s492_s24 }
  0x2e   :  { %p499_p8 = por %p498_p7, %p497_p6 }
  0x30   :  { %p500_p9 = pnand %p499_p8, %p493_p5 }
  0x32   :  { %503 = shalt.err (!%p500_p9)
}
  0x33   :  { %s561_s0 = smov 32   ;;  %s562_s18 = smov 2  }
  0x34   :  { %49 = dma.hbm_to_vmem [thread:$0]  %s696_s2, 64, %s44_s15, [#allocation6], %s561_s0, %s561_s0, %s562_s18  }
  0x35   :  { %548 = dma.done.wait [#allocation3], 256  }
  0x36   :  { %549 = vsyncadd [#allocation3], 4294967040 }
  0x37   :  { %550 = dma.done.wait [#allocation6], 320  }
  0x38   :  { %551 = vsyncadd [#allocation6], 4294966976  ;;  %v563_v0 = vmov 0.0   ;;  %vm564_vm0 = vmmov 0   ;;  %v63_v1 = vld [vmem:[#allocation5] sm:$0xff]  ;;  %v64_v2 = vld [vmem:[#allocation5 + $0x8] sm:$0xff]  ;;  %v92_v25 = vlaneseq }
  0x39   :  { %417 = vmatprep.subr.mxu0 %v563_v0  ;;  %422 = vmatprep.subr.mxu1 %v563_v0  ;;  %v410_v3 = vld [vmem:[#allocation7] sm:$0xf]   ;;  %vm111_vm1 = vcmask 261120   ;;  %v119_v4 = vmul.f32 %v64_v2, %v64_v2  ;;  %v62_v8 = vld [vmem:[#allocation2 + $0x8] sm:$0xff]  ;;  %vm71_vm2 = vcmask 64512   ;;  %v118_v11 = vmul.f32 %v63_v1, %v63_v1  ;;  %s565_s2 = smov [#allocation9]  }
  0x3a   :  { %419 = vmatprep.mubr.msk.f32.mxu0 %vm564_vm0, %v563_v0  ;;  %424 = vmatprep.mubr.msk.f32.mxu1 %vm564_vm0, %v563_v0  ;;  %v411_v5 = vunpack.c.0.s8 %v410_v3  ;;  %v412_v6 = vunpack.c.1.s8 %v410_v3  ;;  %v61_v7 = vld [vmem:[#allocation2] sm:$0xff]  ;;  %v110_v10 = vmul.f32 %v62_v8, %v62_v8  ;;  %v93_v28 = vand.u32 127, %v92_v25  ;;  %s390_s29 = sshll.u32 %s565_s2, 4  ;;  %s391_s29 = int_to_ptr.vmem [resolvable:$true] %s390_s29 }
  0x3b   :  { %418 = vmatpush3.msra.mxu0 %v63_v1  ;;  %423 = vmatpush3.msra.mxu1 %v64_v2  ;;  %v109_v9 = vmul.f32 %v61_v7, %v61_v7  ;;  %v123_v14 = vsel %vm111_vm1, %v119_v4, 0.0  ;;  %v120_v17 = vsel %vm111_vm1, %v118_v11, 0.0  ;;  %v649_v29 = vshrl.u32 %v92_v25, 7  ;;  %s504_s30 = scalar_lea.vmem %s391_s29, 256  ;;  %p509_p11 = scmp.lt.s32.totalorder %s391_s29, %s391_s29 }
  0x3c   :  { %v69_v12 = vcvt.s32.f32 %v411_v5  ;;  %v70_v13 = vcvt.s32.f32 %v412_v6  ;;  %124 = vadd.xlane.f32.xlu0 %v123_v14  ;;  %v115_v16 = vsel %vm111_vm1, %v110_v10, 0.0  ;;  %vm102_vm3 = vcmask 1041409   ;;  %p505_p10 = scmp.ne.s32.totalorder %s391_s29, %s504_s30  ;;  %p510_p12 = scmp.lt.s32.totalorder %s504_s30, %s504_s30 }
  0x3d   :  { %v112_v15 = vsel %vm111_vm1, %v109_v9, 0.0  ;;  %v96_v32 = vsub.s32 %v93_v28, %v649_v29  ;;  %vm105_vm4 = vcmask 58368   ;;  %v340_v10 = vsub.s32 0, %v649_v29 }
  0x3e   :  { %420 = vmatmul.mubr.msk.f32.vlgmr.msra.gmra.mrb[0].mxu0 %vm71_vm2, %v69_v12  ;;  %425 = vmatmul.mubr.msk.f32.vlgmr.msra.gmra.mrb[0].mxu1 %vm71_vm2, %v70_v13  ;;  %v72_v18 = vsel %vm71_vm2, %v69_v12, 0.0  ;;  %v75_v19 = vsel %vm71_vm2, %v70_v13, 0.0  ;;  %v344_v11 = vsub.s32 1, %v649_v29  ;;  %p511_p13 = por %p510_p12, %p509_p11 }
  0x3f   :  { %113 = vadd.xlane.f32.xlu1 %v112_v15  ;;  %v84_v20 = vrot.slane %v75_v19, 4  ;;  %v78_v22 = vrot.slane %v72_v18, 4 }
  0x40   :  { %116 = vadd.xlane.f32.xlu0 %v115_v16  ;;  %p512_p0 = pnand %p511_p13, %p505_p10 }
  0x41   :  { %v85_v21 = vadd.f32 %v84_v20, %v75_v19  ;;  %v79_v24 = vadd.f32 %v78_v22, %v72_v18 }
  0x43   :  { %121 = vadd.xlane.f32.xlu1 %v120_v17  ;;  %v86_v23 = vrot.slane %v85_v21, 2  ;;  %v80_v27 = vrot.slane %v79_v24, 2 }
  0x44   :  { %73 = vadd.xlane.f32.xlu0 %v72_v18 }
  0x45   :  { %v87_v26 = vadd.f32 %v86_v23, %v85_v21  ;;  %v81_v31 = vadd.f32 %v80_v27, %v79_v24 }
  0x47   :  { %76 = vadd.xlane.f32.xlu1 %v75_v19  ;;  %v88_v30 = vrot.slane %v87_v26, 1  ;;  %v82_v36 = vrot.slane %v81_v31, 1 }
  0x49   :  { %v89_v33 = vadd.f32 %v88_v30, %v87_v26  ;;  %v83_v39 = vadd.f32 %v82_v36, %v81_v31 }
  0xc9   :  { %v125_v34 = vpop.xlane.xlu0 %124 }
  0xca   :  { %v298_v35 = vrot.slane %v125_v34, %v96_v32 }
  0xcc   :  { %v114_v37 = vpop.xlane.xlu1 %113  ;;  %v302_v38 = vmul.f32 %v298_v35, %v89_v33 }
  0xcd   :  { %v117_v45 = vpop.xlane.xlu0 %116 }
  0xce   :  { %v305_v41 = vrot.slane %v302_v38, 7 }
  0xd0   :  { %v122_v40 = vpop.xlane.xlu1 %121 }
  0xd1   :  { %v294_v42 = vrot.slane %v122_v40, %v96_v32  ;;  %v74_v46 = vpop.xlane.xlu0 %73 }
  0xd2   :  { %v272_v48 = vmul.f32 %v114_v37, %v74_v46  ;;  %v97_v58 = vrot.slane %v74_v46, %v96_v32 }
  0xd3   :  { %v301_v43 = vmul.f32 %v294_v42, %v83_v39 }
  0xd4   :  { %v77_v47 = vpop.xlane.xlu1 %76  ;;  %v279_v50 = vrot.slane %v272_v48, %v96_v32 }
  0xd5   :  { %v306_v44 = vsel %vm102_vm3, %v305_v41, %v301_v43  ;;  %v273_v49 = vmul.f32 %v117_v45, %v77_v47  ;;  %v101_v59 = vrot.slane %v77_v47, %v96_v32 }
  0xd6   :  { %v308_v63 = vsel %vm105_vm4, %v306_v44, 0.0 }
  0xd7   :  { %v283_v51 = vrot.slane %v273_v49, %v96_v32  ;;  %v103_v1 = vsel %vm102_vm3, %v101_v59, %v97_v58 }
  0xd8   :  { %v106_v2 = vsel %vm105_vm4, %v103_v1, 0.0 }
  0xd9   :  { %v284_v60 = vsel %vm102_vm3, %v283_v51, %v279_v50 }
  0xda   :  { %v286_v0 = vsel %vm105_vm4, %v284_v60, 0.0 }
 0x111   :  { %v195_v52 = vpop.f32.mrb[0].mxu0  ;;  %v268_v53 = vpop.f32.mrb[0].mxu1 }
 0x112   :  { %v311_v54 = vmul.f32 %v195_v52, %v61_v7  ;;  %v312_v55 = vmul.f32 %v268_v53, %v62_v8  ;;  %v421_v56 = vpop.f32.mrb[1].mxu0  ;;  %v426_v57 = vpop.f32.mrb[1].mxu1 }
 0x114   :  { %v313_v61 = vsel %vm111_vm1, %v311_v54, 0.0  ;;  %v316_v62 = vsel %vm111_vm1, %v312_v55, 0.0 }
 0x115   :  { %314 = vadd.xlane.f32.xlu0 %v313_v61  ;;  %317 = vadd.xlane.f32.xlu1 %v316_v62 }
 0x119   :  { %309 = vadd.xlane.f32.xlu1 %v308_v63  ;;  %287 = vadd.xlane.f32.xlu0 %v286_v0 }
 0x11d   :  { %107 = vadd.xlane.f32.xlu1 %v106_v2 }
 0x1a2   :  { %v315_v3 = vpop.xlane.xlu0 %314  ;;  %v318_v4 = vpop.xlane.xlu1 %317 }
 0x1a3   :  { %v324_v5 = vrot.slane %v315_v3, %v96_v32  ;;  %v328_v6 = vrot.slane %v318_v4, %v96_v32 }
 0x1a5   :  { %v329_v7 = vsel %vm102_vm3, %v328_v6, %v324_v5 }
 0x1a6   :  { %v331_v8 = vsel %vm105_vm4, %v329_v7, 0.0  ;;  %v310_v9 = vpop.xlane.xlu1 %309 }
 0x1a7   :  { %332 = vadd.xlane.f32.xlu0 %v331_v8 }
 0x1aa   :  { %v108_v12 = vpop.xlane.xlu1 %107 }
 0x1ab   :  { %v356_v13 = vrot.slane %v108_v12, %v340_v10  ;;  %v360_v14 = vrot.slane %v108_v12, %v344_v11 }
 0x1ad   :  { %365 = vst [vmem:[#allocation9] sm:$0xff] %v356_v13  ;;  %366 = vst [vmem:[#allocation9 + $0x8] sm:$0xff] %v360_v14 }
 0x1ae   :  { %515 = shalt.err (!%p512_p0)
}
 0x1af   :  { %s516_s7 = scalar_lea.hbm %s698_s4, 256 }
 0x1b0   :  { %p517_p1 = scmp.ne.s32.totalorder %s698_s4, %s516_s7  ;;  %p520_p2 = scmp.lt.u32.totalorder %s516_s7, %s698_s4 }
 0x1b2   :  { %p522_p3 = pnand %p520_p2, %p517_p1 }
 0x1b4   :  { %525 = shalt.err (!%p522_p3)
}
 0x1b5   :  { %396 = dma.vmem_to_hbm [thread:$0]  %s391_s29, 256, %s698_s4, [#allocation10], %s558_s27, %s558_s27, %s559_s28   ;;  %v288_v15 = vpop.xlane.xlu0 %287 }
 0x1b6   :  { %v334_v17 = vadd.f32 %v310_v9, %v288_v15  ;;  %s566_s13 = smov [#allocation8]  }
 0x1b7   :  { %s375_s14 = sshll.u32 %s566_s13, 4  ;;  %s376_s14 = int_to_ptr.vmem [resolvable:$true] %s375_s14 }
 0x1b8   :  { %s526_s15 = scalar_lea.vmem %s376_s14, 256  ;;  %p531_p5 = scmp.lt.s32.totalorder %s376_s14, %s376_s14 }
 0x1b9   :  { %p527_p4 = scmp.ne.s32.totalorder %s376_s14, %s526_s15  ;;  %p532_p6 = scmp.lt.s32.totalorder %s526_s15, %s526_s15 }
 0x1bb   :  { %p533_p7 = por %p532_p6, %p531_p5 }
 0x1bd   :  { %p534_p8 = pnand %p533_p7, %p527_p4 }
 0x234   :  { %v333_v16 = vpop.xlane.xlu0 %332 }
 0x235   :  { %v335_v18 = vmul.f32 2.0, %v333_v16 }
 0x237   :  { %v336_v19 = vsub.f32 %v334_v17, %v335_v18 }
 0x239   :  { %v341_v20 = vrot.slane %v336_v19, %v340_v10  ;;  %v345_v21 = vrot.slane %v336_v19, %v344_v11 }
 0x23b   :  { %350 = vst [vmem:[#allocation8] sm:$0xff] %v341_v20  ;;  %351 = vst [vmem:[#allocation8 + $0x8] sm:$0xff] %v345_v21 }
 0x23c   :  { %537 = shalt.err (!%p534_p8)
}
 0x23d   :  { %s538_s17 = scalar_lea.hbm %s697_s3, 256 }
 0x23e   :  { %p539_p9 = scmp.ne.s32.totalorder %s697_s3, %s538_s17  ;;  %p542_p10 = scmp.lt.u32.totalorder %s538_s17, %s697_s3 }
 0x240   :  { %p544_p11 = pnand %p542_p10, %p539_p9 }
 0x242   :  { %547 = shalt.err (!%p544_p11)
}
 0x243   :  { %381 = dma.vmem_to_hbm [thread:$0]  %s376_s14, 256, %s697_s3, [#allocation4], %s558_s27, %s558_s27, %s559_s28  }
 0x244   :  { %552 = dma.done.wait [#allocation4], 256  }
 0x245   :  { %553 = vsyncadd [#allocation4], 4294967040 }
 0x246   :  { %554 = dma.done.wait [#allocation10], 256  }
 0x247   :  { %555 = vsyncadd [#allocation10], 4294967040 }
 0x248   :  { %403 = vsyncpa [#allocation3], 1 }
 0x249   :  { %404 = vsyncpa [#allocation6], 1 }
 0x24a   :  { %405 = vsyncpa [#allocation4], 1 }
 0x24b   :  { %406 = vsyncpa [#allocation10], 1 }

// kernel: mse_corresponding_loss.3
= control target key start
LH: loop header
LB: loop body
LE: loop exit
PB: predicated region body
PF: predicated region fallthrough
CT: control target
= control target key end

     0   :  { %s108_s0 = inlined_call_operand.vmem [shape: f32[16,128], index: 0, kind: input, shape index: {}]   ;;  %s109_s1 = inlined_call_operand.vmem [shape: f32[16,128], index: 1, kind: input, shape index: {}]   ;;  %s110_s2 = inlined_call_operand.vmem [shape: f32[16,128], index: 2, kind: input, shape index: {}]   ;;  %s111_s3 = inlined_call_operand.vmem [shape: f32[16,128], index: 3, kind: input, shape index: {}]   ;;  %s112_s4 = inlined_call_operand.vmem [shape: f32[1,8,128], index: 4, kind: output, shape index: {}]  }
   0x1   :  { %v17_v0 = vld [vmem:[%s108_s0] sm:$0xff]  ;;  %v18_v1 = vld [vmem:[%s108_s0 + $0x8] sm:$0xff] }
   0x2   :  { %v19_v2 = vld [vmem:[%s109_s1] sm:$0xff]  ;;  %v20_v3 = vld [vmem:[%s109_s1 + $0x8] sm:$0xff] }
   0x3   :  { %v21_v4 = vsub.f32 %v17_v0, %v19_v2  ;;  %v27_v5 = vld [vmem:[%s110_s2] sm:$0xff]  ;;  %v28_v6 = vld [vmem:[%s110_s2 + $0x8] sm:$0xff]  ;;  %v22_v7 = vsub.f32 %v18_v1, %v20_v3 }
   0x4   :  { %v29_v8 = vld [vmem:[%s111_s3] sm:$0xff]  ;;  %v30_v9 = vld [vmem:[%s111_s3 + $0x8] sm:$0xff] }
   0x5   :  { %v23_v10 = vmul.f32 %v21_v4, %v21_v4  ;;  %v31_v11 = vsub.f32 %v27_v5, %v29_v8  ;;  %v32_v12 = vsub.f32 %v28_v6, %v30_v9  ;;  %v24_v13 = vmul.f32 %v22_v7, %v22_v7 }
   0x7   :  { %v33_v14 = vmul.f32 %v31_v11, %v31_v11  ;;  %v34_v15 = vmul.f32 %v32_v12, %v32_v12 }
   0x9   :  { %v35_v16 = vadd.f32 %v33_v14, %v23_v10  ;;  %v36_v17 = vadd.f32 %v34_v15, %v24_v13 }
   0xb   :  { %v37_v18 = vadd.f32 %v36_v17, %v35_v16 }
   0xd   :  { %38 = vadd.xlane.f32.xlu0 %v37_v18 }
  0x9a   :  { %v39_v19 = vpop.xlane.xlu0 %38 }
  0x9b   :  { %v40_v20 = vrot.slane %v39_v19, 4 }
  0x9d   :  { %v41_v21 = vadd.f32 %v40_v20, %v39_v19 }
  0x9f   :  { %v42_v22 = vrot.slane %v41_v21, 2 }
  0xa1   :  { %v43_v23 = vadd.f32 %v42_v22, %v41_v21 }
  0xa3   :  { %v44_v24 = vrot.slane %v43_v23, 1 }
  0xa5   :  { %v45_v25 = vadd.f32 %v44_v24, %v43_v23 }
  0xa7   :  { %54 = vpush %v45_v25 }
  0xd8   :  { %s55_s1 = spop %54 }
  0xd9   :  { %v47_v26 = vstv %s55_s1 }
  0xda   :  { %49 = vst [vmem:[%s112_s4] sm:$0xff] %v47_v26 }

</bundles_post_ra>
